<compile_context>
chip_gen: v7x
topology: tpu7x:2x2x1
jax: 0.10.0
libtpu: 0.0.40
codegen_flags: <defaults>
</compile_context>

<pallas_src>
import functools

import jax
import jax.numpy as jnp
import numpy as np
from jax.experimental import pallas as pl
from jax.experimental.pallas import tpu as pltpu


def _round_up(x, m):
    return ((x + m - 1) // m) * m


# ----------------------------- Pallas kernel --------------------------------

def predictor_kernel(x_ref,
                     w1_ref, b1_ref,
                     w2_ref, b2_ref,
                     w3_ref, b3_ref,
                     w4_ref, b4_ref,
                     out_ref,
                     *, state_space):
    # fc1 + ReLU as VPU broadcast-FMAs in f32 (K=state_space is tiny; skip MXU).
    x = x_ref[...]                                   # (TB, S) f32
    w1 = w1_ref[...]                                 # (S, 512) f32
    acc = x[:, 0:1] * w1[0:1, :]
    for s in range(1, state_space):
        acc = acc + x[:, s:s + 1] * w1[s:s + 1, :]
    h = (acc + b1_ref[...]).astype(jnp.bfloat16)     # cast-then-ReLU (identical for ReLU)
    h = jnp.maximum(h, 0)

    # fc2 + ReLU : (TB, 512) @ (512, 512) + (1, 512)   bf16 operands, f32 acc
    h = (jnp.dot(h, w2_ref[...], preferred_element_type=jnp.float32)
         + b2_ref[...]).astype(jnp.bfloat16)
    h = jnp.maximum(h, 0)

    # fc3 + ReLU : (TB, 512) @ (512, 256) + (1, 256)
    h = (jnp.dot(h, w3_ref[...], preferred_element_type=jnp.float32)
         + b3_ref[...]).astype(jnp.bfloat16)
    h = jnp.maximum(h, 0)

    # out (no activation) : (TB, 256) @ (256, 256) + (1, 256)  -> f32 output
    out_ref[...] = (jnp.dot(h, w4_ref[...], preferred_element_type=jnp.float32)
                    + b4_ref[...])


# ------------------------------ host wrapper ---------------------------------

def _choose_batch_tile(B, batch_tile):
    """Pick a batch tile (multiple of 8) and the padded batch Bp (multiple of tile)."""
    b8 = _round_up(B, 8)
    tb = min(batch_tile, b8)
    # Guarantee >= 2 grid steps for B >= 16 so v7x's two TCs both get work.
    if b8 // tb < 2 and B >= 16:
        tb = _round_up((b8 + 1) // 2, 8)
    Bp = _round_up(b8, tb)
    return tb, Bp


def predictor_net_forward(x, params, *, batch_tile=512):
    """x: (B, state_space) f32.  Returns (B, 256) f32."""
    (w1, b1), (w2, b2), (w3, b3), (w4, b4) = params
    B, S = x.shape
    assert w1.shape[0] == S
    H1 = w1.shape[1]
    H2 = w2.shape[1]
    H3 = w3.shape[1]
    O = w4.shape[1]

    tb, Bp = _choose_batch_tile(B, batch_tile)
    x_p = x if Bp == B else jnp.pad(x, ((0, Bp - B), (0, 0)))

    vmem = pltpu.MemorySpace.VMEM

    def resident(shape):
        # Constant block index -> stays in VMEM across grid steps; no second buffer.
        return pl.BlockSpec(shape, lambda i: (0, 0), memory_space=vmem,
                            pipeline_mode=pl.Buffered(1))

    flops_per_row = 2 * (S * H1 + H1 * H2 + H2 * H3 + H3 * O)
    weight_bytes = (w1.size * w1.dtype.itemsize + b1.size * 4
                    + w2.size * w2.dtype.itemsize + b2.size * 4
                    + w3.size * w3.dtype.itemsize + b3.size * 4
                    + w4.size * w4.dtype.itemsize + b4.size * 4)
    cost = pl.CostEstimate(
        flops=flops_per_row * Bp,
        transcendentals=0,
        bytes_accessed=Bp * (S * 4 + O * 4) + weight_bytes,
    )

    kernel = functools.partial(predictor_kernel, state_space=S)

    out = pl.pallas_call(
        kernel,
        out_shape=jax.ShapeDtypeStruct((Bp, O), jnp.float32),
        grid=(Bp // tb,),
        in_specs=[
            pl.BlockSpec((tb, S), lambda i: (i, 0), memory_space=vmem),   # x
            resident((S, H1)),  resident((1, H1)),                        # fc1
            resident((H1, H2)), resident((1, H2)),                        # fc2
            resident((H2, H3)), resident((1, H3)),                        # fc3
            resident((H3, O)),  resident((1, O)),                         # out
        ],
        out_specs=pl.BlockSpec((tb, O), lambda i: (i, 0), memory_space=vmem),
        compiler_params=pltpu.CompilerParams(
            dimension_semantics=("parallel",),      # shard batch tiles across TCs (v7x)
            vmem_limit_bytes=32 * 1024 * 1024,      # explicit; safe on v5e's 16 MiB default
        ),
        cost_estimate=cost,
    )(x_p, w1, b1, w2, b2, w3, b3, w4, b4)

    return out[:B]


# --------------------- deterministic parameter init --------------------------

def orthogonal_(key, out_features, in_features, gain):
    """Equivalent of torch.nn.init.orthogonal_ on a (out, in) weight."""
    rows, cols = out_features, in_features
    transpose = rows < cols
    a = jax.random.normal(key, (max(rows, cols), min(rows, cols)), jnp.float32)
    q, r = jnp.linalg.qr(a)
    q = q * jnp.sign(jnp.diagonal(r))        # make decomposition unique
    if transpose:
        q = q.T
    w = q[:rows, :cols]
    return gain * w                          # (out, in)


def layer_init(key, in_features, out_features, std=np.sqrt(2), bias_const=0.0,
               w_dtype=jnp.bfloat16):
    """Returns (W, b): W pre-transposed to (in, out) in w_dtype, b (1, out) f32."""
    w = orthogonal_(key, out_features, in_features, std)    # (out, in) f32
    w = jnp.asarray(w.T, jnp.float32).astype(w_dtype)       # (in, out)
    b = jnp.full((1, out_features), bias_const, jnp.float32)
    return w, b


def make_predictor_params(key, state_space):
    k1, k2, k3, k4 = jax.random.split(key, 4)
    fc1 = layer_init(k1, state_space, 512, w_dtype=jnp.float32)   # tiny; VPU path, keep f32
    fc2 = layer_init(k2, 512, 512)
    fc3 = layer_init(k3, 512, 256)
    out = layer_init(k4, 256, 256)
    return (fc1, fc2, fc3, out)


# ------------------------------ reference -----------------------------------

def predictor_net_ref(x, params):
    """Pure-JAX reference mirroring the kernel's numerics (f32 fc1, bf16 fc2..out)."""
    (w1, b1), (w2, b2), (w3, b3), (w4, b4) = params
    h = jnp.dot(x, w1, preferred_element_type=jnp.float32) + b1          # f32 fc1
    h = jnp.maximum(h.astype(jnp.bfloat16), 0)
    h = (jnp.dot(h, w2, preferred_element_type=jnp.float32) + b2).astype(jnp.bfloat16)
    h = jnp.maximum(h, 0)
    h = (jnp.dot(h, w3, preferred_element_type=jnp.float32) + b3).astype(jnp.bfloat16)
    h = jnp.maximum(h, 0)
    return jnp.dot(h, w4, preferred_element_type=jnp.float32) + b4


# --------------------------------- main --------------------------------------

if __name__ == "__main__":
    key = jax.random.PRNGKey(0)
    kx1, kx2, kp = jax.random.split(key, 3)

    state_space = 2          # MountainCar observation dim
    params = make_predictor_params(kp, state_space)

    # Case 1: small batch, single tile (B < 16 keeps a 1-step grid).
    x_small = jax.random.normal(kx1, (8, state_space), jnp.float32)
    y_small = predictor_net_forward(x_small, params)
    jax.block_until_ready(y_small)
    np.testing.assert_allclose(np.asarray(y_small),
                               np.asarray(predictor_net_ref(x_small, params)),
                               rtol=1e-2, atol=1e-2)
    assert y_small.shape == (8, 256)

    # Case 2: non-multiple batch, default tile -> forced >=2-step grid
    # (exercises batch padding, the v7x split path and VMEM-resident weights).
    x_mid = jax.random.normal(kx2, (40, state_space), jnp.float32)
    y_mid = predictor_net_forward(x_mid, params)
    jax.block_until_ready(y_mid)
    np.testing.assert_allclose(np.asarray(y_mid),
                               np.asarray(predictor_net_ref(x_mid, params)),
                               rtol=1e-2, atol=1e-2)
    assert y_mid.shape == (40, 256)

    # Case 3: explicit small batch tile -> multi-step grid (3 steps) with padding.
    y_multi = predictor_net_forward(x_mid, params, batch_tile=16)
    jax.block_until_ready(y_multi)
    np.testing.assert_allclose(np.asarray(y_multi),
                               np.asarray(predictor_net_ref(x_mid, params)),
                               rtol=1e-2, atol=1e-2)
    assert y_multi.shape == (40, 256)

    print("KERNEL_OK")
</pallas_src>

<mosaic_0001>
module attributes {stable_mosaic.version = 11 : i64} {
  func.func @predictor_kernel(%arg0: i32, %arg1: memref<8x2xf32, #tpu.memory_space<vmem>>, %arg2: memref<2x512xf32, #tpu.memory_space<vmem>>, %arg3: memref<1x512xf32, #tpu.memory_space<vmem>>, %arg4: memref<512x512xbf16, #tpu.memory_space<vmem>>, %arg5: memref<1x512xf32, #tpu.memory_space<vmem>>, %arg6: memref<512x256xbf16, #tpu.memory_space<vmem>>, %arg7: memref<1x256xf32, #tpu.memory_space<vmem>>, %arg8: memref<256x256xbf16, #tpu.memory_space<vmem>>, %arg9: memref<1x256xf32, #tpu.memory_space<vmem>>, %arg10: memref<8x256xf32, #tpu.memory_space<vmem>>) attributes {dimension_semantics = [#tpu.dimension_semantics<parallel>], iteration_bounds = array<i64: 1>, scalar_prefetch = 0 : i64, scratch_operands = 0 : i64, tpu.core_type = #tpu.core_type<tc>, window_params = [{transform_indices = @transform_0, window_bounds = array<i64: 8, 2>}, {pipeline_mode = #tpu.pipeline_mode<synchronous>, transform_indices = @transform_1, window_bounds = array<i64: 2, 512>}, {pipeline_mode = #tpu.pipeline_mode<synchronous>, transform_indices = @transform_2, window_bounds = array<i64: 1, 512>}, {pipeline_mode = #tpu.pipeline_mode<synchronous>, transform_indices = @transform_3, window_bounds = array<i64: 512, 512>}, {pipeline_mode = #tpu.pipeline_mode<synchronous>, transform_indices = @transform_4, window_bounds = array<i64: 1, 512>}, {pipeline_mode = #tpu.pipeline_mode<synchronous>, transform_indices = @transform_5, window_bounds = array<i64: 512, 256>}, {pipeline_mode = #tpu.pipeline_mode<synchronous>, transform_indices = @transform_6, window_bounds = array<i64: 1, 256>}, {pipeline_mode = #tpu.pipeline_mode<synchronous>, transform_indices = @transform_7, window_bounds = array<i64: 256, 256>}, {pipeline_mode = #tpu.pipeline_mode<synchronous>, transform_indices = @transform_8, window_bounds = array<i64: 1, 256>}, {transform_indices = @transform_9, window_bounds = array<i64: 8, 256>}]} {
    %c0 = arith.constant 0 : index
    %c0_0 = arith.constant 0 : index
    %0 = vector.load %arg1[%c0, %c0_0] : memref<8x2xf32, #tpu.memory_space<vmem>>, vector<8x2xf32>
    %c0_1 = arith.constant 0 : index
    %c0_2 = arith.constant 0 : index
    %1 = vector.load %arg2[%c0_1, %c0_2] : memref<2x512xf32, #tpu.memory_space<vmem>>, vector<2x512xf32>
    %2 = vector.extract_strided_slice %0 {offsets = [0, 0], sizes = [8, 1], strides = [1, 1]} : vector<8x2xf32> to vector<8x1xf32>
    %3 = vector.extract_strided_slice %1 {offsets = [0, 0], sizes = [1, 512], strides = [1, 1]} : vector<2x512xf32> to vector<1x512xf32>
    %4 = vector.broadcast %2 : vector<8x1xf32> to vector<8x512xf32>
    %5 = vector.broadcast %3 : vector<1x512xf32> to vector<8x512xf32>
    %6 = arith.mulf %4, %5 : vector<8x512xf32>
    %7 = vector.extract_strided_slice %0 {offsets = [0, 1], sizes = [8, 1], strides = [1, 1]} : vector<8x2xf32> to vector<8x1xf32>
    %8 = vector.extract_strided_slice %1 {offsets = [1, 0], sizes = [1, 512], strides = [1, 1]} : vector<2x512xf32> to vector<1x512xf32>
    %9 = vector.broadcast %7 : vector<8x1xf32> to vector<8x512xf32>
    %10 = vector.broadcast %8 : vector<1x512xf32> to vector<8x512xf32>
    %11 = arith.mulf %9, %10 : vector<8x512xf32>
    %12 = arith.addf %6, %11 : vector<8x512xf32>
    %c0_3 = arith.constant 0 : index
    %c0_4 = arith.constant 0 : index
    %13 = vector.load %arg3[%c0_3, %c0_4] : memref<1x512xf32, #tpu.memory_space<vmem>>, vector<1x512xf32>
    %14 = vector.broadcast %13 : vector<1x512xf32> to vector<8x512xf32>
    %15 = arith.addf %12, %14 : vector<8x512xf32>
    %16 = arith.truncf %15 : vector<8x512xf32> to vector<8x512xbf16>
    %cst = arith.constant 0.000000e+00 : bf16
    %17 = vector.broadcast %cst : bf16 to vector<8x512xbf16>
    %18 = arith.maximumf %16, %17 : vector<8x512xbf16>
    %c0_5 = arith.constant 0 : index
    %c0_6 = arith.constant 0 : index
    %19 = vector.load %arg4[%c0_5, %c0_6] : memref<512x512xbf16, #tpu.memory_space<vmem>>, vector<512x512xbf16>
    %cst_7 = arith.constant dense<0.000000e+00> : vector<8x512xf32>
    %20 = tpu.matmul %18, %19, %cst_7 {dimension_numbers = #tpu.dot_dimension_numbers<[1], [0], [0], [1], [0, 0, 1, 1], [], []>} : vector<8x512xbf16>, vector<512x512xbf16>, vector<8x512xf32> -> vector<8x512xf32>
    %c0_8 = arith.constant 0 : index
    %c0_9 = arith.constant 0 : index
    %21 = vector.load %arg5[%c0_8, %c0_9] : memref<1x512xf32, #tpu.memory_space<vmem>>, vector<1x512xf32>
    %22 = vector.broadcast %21 : vector<1x512xf32> to vector<8x512xf32>
    %23 = arith.addf %20, %22 : vector<8x512xf32>
    %24 = arith.truncf %23 : vector<8x512xf32> to vector<8x512xbf16>
    %cst_10 = arith.constant 0.000000e+00 : bf16
    %25 = vector.broadcast %cst_10 : bf16 to vector<8x512xbf16>
    %26 = arith.maximumf %24, %25 : vector<8x512xbf16>
    %c0_11 = arith.constant 0 : index
    %c0_12 = arith.constant 0 : index
    %27 = vector.load %arg6[%c0_11, %c0_12] : memref<512x256xbf16, #tpu.memory_space<vmem>>, vector<512x256xbf16>
    %cst_13 = arith.constant dense<0.000000e+00> : vector<8x256xf32>
    %28 = tpu.matmul %26, %27, %cst_13 {dimension_numbers = #tpu.dot_dimension_numbers<[1], [0], [0], [1], [0, 0, 1, 1], [], []>} : vector<8x512xbf16>, vector<512x256xbf16>, vector<8x256xf32> -> vector<8x256xf32>
    %c0_14 = arith.constant 0 : index
    %c0_15 = arith.constant 0 : index
    %29 = vector.load %arg7[%c0_14, %c0_15] : memref<1x256xf32, #tpu.memory_space<vmem>>, vector<1x256xf32>
    %30 = vector.broadcast %29 : vector<1x256xf32> to vector<8x256xf32>
    %31 = arith.addf %28, %30 : vector<8x256xf32>
    %32 = arith.truncf %31 : vector<8x256xf32> to vector<8x256xbf16>
    %cst_16 = arith.constant 0.000000e+00 : bf16
    %33 = vector.broadcast %cst_16 : bf16 to vector<8x256xbf16>
    %34 = arith.maximumf %32, %33 : vector<8x256xbf16>
    %c0_17 = arith.constant 0 : index
    %c0_18 = arith.constant 0 : index
    %35 = vector.load %arg8[%c0_17, %c0_18] : memref<256x256xbf16, #tpu.memory_space<vmem>>, vector<256x256xbf16>
    %cst_19 = arith.constant dense<0.000000e+00> : vector<8x256xf32>
    %36 = tpu.matmul %34, %35, %cst_19 {dimension_numbers = #tpu.dot_dimension_numbers<[1], [0], [0], [1], [0, 0, 1, 1], [], []>} : vector<8x256xbf16>, vector<256x256xbf16>, vector<8x256xf32> -> vector<8x256xf32>
    %c0_20 = arith.constant 0 : index
    %c0_21 = arith.constant 0 : index
    %37 = vector.load %arg9[%c0_20, %c0_21] : memref<1x256xf32, #tpu.memory_space<vmem>>, vector<1x256xf32>
    %38 = vector.broadcast %37 : vector<1x256xf32> to vector<8x256xf32>
    %39 = arith.addf %36, %38 : vector<8x256xf32>
    %c0_22 = arith.constant 0 : index
    %c0_23 = arith.constant 0 : index
    %40 = vector.load %arg10[%c0_22, %c0_23] : memref<8x256xf32, #tpu.memory_space<vmem>>, vector<8x256xf32>
    tpu.vector_store %arg10[%c0_22, %c0_23], %39 {strides = array<i32>} : memref<8x256xf32, #tpu.memory_space<vmem>>, vector<8x256xf32>,
    return
  }
  func.func @transform_0(%arg0: i32) -> (i32, i32) {
    %c0_i32 = arith.constant 0 : i32
    %c0_i32_0 = arith.constant 0 : i32
    return %arg0, %c0_i32 : i32, i32
  }
  func.func @transform_1(%arg0: i32) -> (i32, i32) {
    %c0_i32 = arith.constant 0 : i32
    %c0_i32_0 = arith.constant 0 : i32
    %c0_i32_1 = arith.constant 0 : i32
    return %c0_i32, %c0_i32_0 : i32, i32
  }
  func.func @transform_2(%arg0: i32) -> (i32, i32) {
    %c0_i32 = arith.constant 0 : i32
    %c0_i32_0 = arith.constant 0 : i32
    %c0_i32_1 = arith.constant 0 : i32
    return %c0_i32, %c0_i32_0 : i32, i32
  }
  func.func @transform_3(%arg0: i32) -> (i32, i32) {
    %c0_i32 = arith.constant 0 : i32
    %c0_i32_0 = arith.constant 0 : i32
    %c0_i32_1 = arith.constant 0 : i32
    return %c0_i32, %c0_i32_0 : i32, i32
  }
  func.func @transform_4(%arg0: i32) -> (i32, i32) {
    %c0_i32 = arith.constant 0 : i32
    %c0_i32_0 = arith.constant 0 : i32
    %c0_i32_1 = arith.constant 0 : i32
    return %c0_i32, %c0_i32_0 : i32, i32
  }
  func.func @transform_5(%arg0: i32) -> (i32, i32) {
    %c0_i32 = arith.constant 0 : i32
    %c0_i32_0 = arith.constant 0 : i32
    %c0_i32_1 = arith.constant 0 : i32
    return %c0_i32, %c0_i32_0 : i32, i32
  }
  func.func @transform_6(%arg0: i32) -> (i32, i32) {
    %c0_i32 = arith.constant 0 : i32
    %c0_i32_0 = arith.constant 0 : i32
    %c0_i32_1 = arith.constant 0 : i32
    return %c0_i32, %c0_i32_0 : i32, i32
  }
  func.func @transform_7(%arg0: i32) -> (i32, i32) {
    %c0_i32 = arith.constant 0 : i32
    %c0_i32_0 = arith.constant 0 : i32
    %c0_i32_1 = arith.constant 0 : i32
    return %c0_i32, %c0_i32_0 : i32, i32
  }
  func.func @transform_8(%arg0: i32) -> (i32, i32) {
    %c0_i32 = arith.constant 0 : i32
    %c0_i32_0 = arith.constant 0 : i32
    %c0_i32_1 = arith.constant 0 : i32
    return %c0_i32, %c0_i32_0 : i32, i32
  }
  func.func @transform_9(%arg0: i32) -> (i32, i32) {
    %c0_i32 = arith.constant 0 : i32
    %c0_i32_0 = arith.constant 0 : i32
    return %arg0, %c0_i32 : i32, i32
  }
}

</mosaic_0001>

<bundles_post_ra>
// kernel: tpu_custom_call.1
= control target key start
LH: loop header
LB: loop body
LE: loop exit
PB: predicated region body
PF: predicated region fallthrough
CT: control target
= control target key end

     0   :  { %14 = vsyncpa [#allocation3], 0  ;;  %s2810_s0 = inlined_call_operand.vmem [shape: f32[8,2], index: 0, kind: input, shape index: {}]   ;;  %s2811_s1 = inlined_call_operand.vmem [shape: f32[2,512], index: 1, kind: input, shape index: {}]   ;;  %s2812_s2 = inlined_call_operand.vmem [shape: f32[1,512], index: 2, kind: input, shape index: {}]   ;;  %s2813_s3 = inlined_call_operand.hbm [shape: bf16[512,512], index: 3, kind: input, shape index: {}]   ;;  %s2814_s4 = inlined_call_operand.vmem [shape: f32[1,512], index: 4, kind: input, shape index: {}]   ;;  %s2815_s5 = inlined_call_operand.hbm [shape: bf16[512,256], index: 5, kind: input, shape index: {}]   ;;  %s2816_s6 = inlined_call_operand.vmem [shape: f32[1,256], index: 6, kind: input, shape index: {}]   ;;  %s2817_s7 = inlined_call_operand.hbm [shape: bf16[256,256], index: 7, kind: input, shape index: {}]   ;;  %s2818_s8 = inlined_call_operand.vmem [shape: f32[1,256], index: 8, kind: input, shape index: {}]   ;;  %s2819_s9 = inlined_call_operand.hbm [shape: f32[8,256], index: 9, kind: output, shape index: {}]  }
   0x1   :  { %15 = vsyncpa [#allocation6], 0 }
   0x2   :  { %16 = vsyncpa [#allocation4], 0  ;;  %s2596_s30 = smov [#allocation5]   ;;  %s2502_s13 = scalar_lea.hbm %s2815_s5, 8192 }
   0x3   :  { %s42_s10 = sshll.u32 %s2596_s30, 4  ;;  %p2503_p0 = scmp.ne.s32.totalorder %s2815_s5, %s2502_s13  ;;  %s43_s10 = int_to_ptr.vmem [resolvable:$true] %s42_s10 }
   0x4   :  { %p2506_p1 = scmp.lt.u32.totalorder %s2502_s13, %s2815_s5 }
   0x6   :  { %p2508_p2 = pnand %p2506_p1, %p2503_p0 }
   0x8   :  { %2511 = shalt.err (!%p2508_p2)
}
   0x9   :  { %s2512_s18 = scalar_lea.vmem %s43_s10, 8192  ;;  %p2517_p4 = scmp.lt.s32.totalorder %s43_s10, %s43_s10 }
   0xa   :  { %p2513_p3 = scmp.ne.s32.totalorder %s43_s10, %s2512_s18  ;;  %p2518_p5 = scmp.lt.s32.totalorder %s2512_s18, %s2512_s18 }
   0xc   :  { %p2519_p6 = por %p2518_p5, %p2517_p4 }
   0xe   :  { %p2520_p7 = pnand %p2519_p6, %p2513_p3 }
  0x10   :  { %2523 = shalt.err (!%p2520_p7)
}
  0x11   :  { %s2597_s19 = smov 128   ;;  %s2598_s20 = smov 8  }
  0x12   :  { %48 = dma.hbm_to_vmem [thread:$0]  %s2815_s5, 8192, %s43_s10, [#allocation6], %s2597_s19, %s2597_s19, %s2598_s20  }
  0x13   :  { %s2599_s23 = smov [#allocation2]   ;;  %s2524_s27 = scalar_lea.hbm %s2813_s3, 16384 }
  0x14   :  { %s28_s24 = sshll.u32 %s2599_s23, 4  ;;  %p2525_p8 = scmp.ne.s32.totalorder %s2813_s3, %s2524_s27  ;;  %s29_s24 = int_to_ptr.vmem [resolvable:$true] %s28_s24 }
  0x15   :  { %p2528_p9 = scmp.lt.u32.totalorder %s2524_s27, %s2813_s3 }
  0x17   :  { %p2530_p10 = pnand %p2528_p9, %p2525_p8 }
  0x19   :  { %2533 = shalt.err (!%p2530_p10)
}
  0x1a   :  { %s2534_s12 = scalar_lea.vmem %s29_s24, 16384  ;;  %p2539_p12 = scmp.lt.s32.totalorder %s29_s24, %s29_s24 }
  0x1b   :  { %p2535_p11 = scmp.ne.s32.totalorder %s29_s24, %s2534_s12  ;;  %p2540_p13 = scmp.lt.s32.totalorder %s2534_s12, %s2534_s12 }
  0x1d   :  { %p2541_p0 = por %p2540_p13, %p2539_p12 }
  0x1f   :  { %p2542_p1 = pnand %p2541_p0, %p2535_p11 }
  0x21   :  { %2545 = shalt.err (!%p2542_p1)
}
  0x22   :  { %s2600_s5 = smov 256   ;;  %s2601_s10 = smov 16  }
  0x23   :  { %34 = dma.hbm_to_vmem [thread:$0]  %s2813_s3, 16384, %s29_s24, [#allocation3], %s2600_s5, %s2600_s5, %s2601_s10  }
  0x24   :  { %s2602_s15 = smov [#allocation7]   ;;  %s2546_s21 = scalar_lea.hbm %s2817_s7, 4096 }
  0x25   :  { %s56_s16 = sshll.u32 %s2602_s15, 4  ;;  %p2547_p2 = scmp.ne.s32.totalorder %s2817_s7, %s2546_s21  ;;  %s57_s16 = int_to_ptr.vmem [resolvable:$true] %s56_s16 }
  0x26   :  { %p2550_p3 = scmp.lt.u32.totalorder %s2546_s21, %s2817_s7 }
  0x28   :  { %p2552_p4 = pnand %p2550_p3, %p2547_p2 }
  0x2a   :  { %2555 = shalt.err (!%p2552_p4)
}
  0x2b   :  { %s2556_s27 = scalar_lea.vmem %s57_s16, 4096  ;;  %p2561_p6 = scmp.lt.s32.totalorder %s57_s16, %s57_s16 }
  0x2c   :  { %p2557_p5 = scmp.ne.s32.totalorder %s57_s16, %s2556_s27  ;;  %p2562_p7 = scmp.lt.s32.totalorder %s2556_s27, %s2556_s27 }
  0x2e   :  { %p2563_p8 = por %p2562_p7, %p2561_p6 }
  0x30   :  { %p2564_p9 = pnand %p2563_p8, %p2557_p5 }
  0x32   :  { %2567 = shalt.err (!%p2564_p9)
}
  0x33   :  { %62 = dma.hbm_to_vmem [thread:$0]  %s2817_s7, 4096, %s57_s16, [#allocation6], %s2597_s19, %s2597_s19, %s2598_s20  }
  0x34   :  { %2590 = dma.done.wait [#allocation3], 16384  }
  0x35   :  { %2591 = vsyncadd [#allocation3], 4294950912 }
  0x36   :  { %2592 = dma.done.wait [#allocation6], 12288  }
  0x37   :  { %2593 = vsyncadd [#allocation6], 4294955008  ;;  %v2603_v0 = vmov 0   ;;  %v75_v1 = vld [vmem:[%s2810_s0] sm:$0xff]  ;;  %v2168_v3 = vld [vmem:[#allocation2 + $0xc] ss:$16 sps:$4 sm:$0xff]   ;;  %v83_v30 = vlaneseq }
  0x38   :  { %2164 = vset.pattern.permute.xlu0 %v2603_v0  ;;  %v2166_v2 = vld [vmem:[#allocation2 + $0x4] ss:$16 sps:$4 sm:$0xff]   ;;  %v2170_v4 = vld [vmem:[#allocation2] ss:$16 sps:$4 sm:$0xff]   ;;  %v2171_v5 = vld [vmem:[#allocation2 + $0x8] ss:$16 sps:$4 sm:$0xff]   ;;  %1077 = vmatprep.subr.bf16.mxu1 %v2168_v3 }
  0x39   :  { %79 = vperm.xlu0 %2164, %v75_v1   ;;  %995 = vmatprep.subr.bf16.mxu0 %v2166_v2  ;;  %v2172_v6 = vld [vmem:[#allocation2 + $0x24] ss:$16 sps:$4 sm:$0xff]   ;;  %v2174_v7 = vld [vmem:[#allocation2 + $0x2c] ss:$16 sps:$4 sm:$0xff]   ;;  %v2604_v8 = vmov 1   ;;  %v2702_v34 = vshrl.u32 %v83_v30, 7 }
  0x3a   :  { %996 = vmatpush1.bf16.msra.mxu0 %v2170_v4  ;;  %1078 = vmatpush1.bf16.msra.mxu1 %v2171_v5  ;;  %v2176_v9 = vld [vmem:[#allocation2 + $0x20] ss:$16 sps:$4 sm:$0xff]   ;;  %v2177_v10 = vld [vmem:[#allocation2 + $0x28] ss:$16 sps:$4 sm:$0xff]   ;;  %v2178_v11 = vld [vmem:[#allocation2 + $0x44] ss:$16 sps:$4 sm:$0xff]  }
  0x3b   :  { %997 = vmatprep.subr.bf16.mxu0 %v2172_v6  ;;  %1079 = vmatprep.subr.bf16.mxu1 %v2174_v7  ;;  %v2180_v12 = vld [vmem:[#allocation2 + $0x4c] ss:$16 sps:$4 sm:$0xff]   ;;  %v2182_v13 = vld [vmem:[#allocation2 + $0x40] ss:$16 sps:$4 sm:$0xff]   ;;  %v2183_v14 = vld [vmem:[#allocation2 + $0x48] ss:$16 sps:$4 sm:$0xff]  }
  0x3c   :  { %v2184_v15 = vld [vmem:[#allocation2 + $0x64] ss:$16 sps:$4 sm:$0xff]   ;;  %v2186_v16 = vld [vmem:[#allocation2 + $0x6c] ss:$16 sps:$4 sm:$0xff]   ;;  %v2188_v17 = vld [vmem:[#allocation2 + $0x60] ss:$16 sps:$4 sm:$0xff]  }
  0x3d   :  { %2165 = vset.pattern.permute.xlu0 %v2604_v8  ;;  %v2189_v18 = vld [vmem:[#allocation2 + $0x68] ss:$16 sps:$4 sm:$0xff]   ;;  %v2190_v19 = vld [vmem:[#allocation2 + $0x84] ss:$16 sps:$4 sm:$0xff]   ;;  %v2192_v20 = vld [vmem:[#allocation2 + $0x8c] ss:$16 sps:$4 sm:$0xff]  }
  0x3e   :  { %124 = vperm.xlu0 %2165, %v75_v1   ;;  %998 = vmatpush1.bf16.msra.mxu0 %v2176_v9  ;;  %v2194_v21 = vld [vmem:[#allocation2 + $0x80] ss:$16 sps:$4 sm:$0xff]   ;;  %v2195_v22 = vld [vmem:[#allocation2 + $0x88] ss:$16 sps:$4 sm:$0xff]   ;;  %v2196_v23 = vld [vmem:[#allocation2 + $0xa4] ss:$16 sps:$4 sm:$0xff]  }
  0x3f   :  { %1080 = vmatpush1.bf16.msra.mxu1 %v2177_v10  ;;  %999 = vmatprep.subr.bf16.mxu0 %v2178_v11  ;;  %v2198_v24 = vld [vmem:[#allocation2 + $0xac] ss:$16 sps:$4 sm:$0xff]   ;;  %v2200_v25 = vld [vmem:[#allocation2 + $0xa0] ss:$16 sps:$4 sm:$0xff]   ;;  %v2201_v26 = vld [vmem:[#allocation2 + $0xa8] ss:$16 sps:$4 sm:$0xff]  }
  0x40   :  { %1081 = vmatprep.subr.bf16.mxu1 %v2180_v12  ;;  %v2202_v27 = vld [vmem:[#allocation2 + $0xc4] ss:$16 sps:$4 sm:$0xff]   ;;  %v2204_v28 = vld [vmem:[#allocation2 + $0xcc] ss:$16 sps:$4 sm:$0xff]   ;;  %v2206_v29 = vld [vmem:[#allocation2 + $0xc0] ss:$16 sps:$4 sm:$0xff]  }
  0x41   :  { %v2207_v31 = vld [vmem:[#allocation2 + $0xc8] ss:$16 sps:$4 sm:$0xff]   ;;  %v2208_v32 = vld [vmem:[#allocation2 + $0xe4] ss:$16 sps:$4 sm:$0xff]   ;;  %v2210_v33 = vld [vmem:[#allocation2 + $0xec] ss:$16 sps:$4 sm:$0xff]  }
  0x42   :  { %1000 = vmatpush1.bf16.msra.mxu0 %v2182_v13  ;;  %v2212_v35 = vld [vmem:[#allocation2 + $0xe0] ss:$16 sps:$4 sm:$0xff]   ;;  %v2213_v36 = vld [vmem:[#allocation2 + $0xe8] ss:$16 sps:$4 sm:$0xff]   ;;  %v2214_v37 = vld [vmem:[#allocation2 + $0x104] ss:$16 sps:$4 sm:$0xff]  }
  0x43   :  { %1082 = vmatpush1.bf16.msra.mxu1 %v2183_v14  ;;  %1001 = vmatprep.subr.bf16.mxu0 %v2184_v15  ;;  %v2216_v38 = vld [vmem:[#allocation2 + $0x10c] ss:$16 sps:$4 sm:$0xff]   ;;  %v2218_v39 = vld [vmem:[#allocation2 + $0x100] ss:$16 sps:$4 sm:$0xff]   ;;  %v93_v40 = vsub.s32 4, %v2702_v34  ;;  %v137_v42 = vsub.s32 5, %v2702_v34 }
  0x44   :  { %1083 = vmatprep.subr.bf16.mxu1 %v2186_v16  ;;  %v2219_v41 = vld [vmem:[#allocation2 + $0x108] ss:$16 sps:$4 sm:$0xff]   ;;  %v2220_v43 = vld [vmem:[#allocation2 + $0x124] ss:$16 sps:$4 sm:$0xff]   ;;  %v2222_v44 = vld [vmem:[#allocation2 + $0x12c] ss:$16 sps:$4 sm:$0xff]  }
  0x45   :  { %v2709_v45 = vld [vmem:[%s2811_s1] sm:$0xff]  ;;  %v2225_v49 = vld [vmem:[#allocation2 + $0x128] ss:$16 sps:$4 sm:$0xff]   ;;  %v2228_v51 = vld [vmem:[#allocation2 + $0x14c] ss:$16 sps:$4 sm:$0xff]   ;;  %v2718_v13 = vsub.s32 0, %v2702_v34 }
  0x46   :  { %1002 = vmatpush1.bf16.msra.mxu0 %v2188_v17  ;;  %v2712_v46 = vrot.slane %v2709_v45, %v93_v40  ;;  %v2224_v47 = vld [vmem:[#allocation2 + $0x120] ss:$16 sps:$4 sm:$0xff]   ;;  %v2715_v48 = vrot.slane %v2709_v45, %v137_v42  ;;  %v2226_v50 = vld [vmem:[#allocation2 + $0x144] ss:$16 sps:$4 sm:$0xff]   ;;  %v2231_v53 = vld [vmem:[#allocation2 + $0x148] ss:$16 sps:$4 sm:$0xff]  }
  0x47   :  { %1084 = vmatpush1.bf16.msra.mxu1 %v2189_v18  ;;  %1003 = vmatprep.subr.bf16.mxu0 %v2190_v19  ;;  %v2230_v52 = vld [vmem:[#allocation2 + $0x140] ss:$16 sps:$4 sm:$0xff]   ;;  %v2232_v54 = vld [vmem:[#allocation2 + $0x164] ss:$16 sps:$4 sm:$0xff]   ;;  %v2234_v55 = vld [vmem:[#allocation2 + $0x16c] ss:$16 sps:$4 sm:$0xff]   ;;  %v86_v19 = vrot.slane %v2709_v45, %v2718_v13 }
  0x48   :  { %1085 = vmatprep.subr.bf16.mxu1 %v2192_v20  ;;  %v2236_v56 = vld [vmem:[#allocation2 + $0x160] ss:$16 sps:$4 sm:$0xff]   ;;  %v2237_v57 = vld [vmem:[#allocation2 + $0x168] ss:$16 sps:$4 sm:$0xff]   ;;  %v2238_v58 = vld [vmem:[#allocation2 + $0x184] ss:$16 sps:$4 sm:$0xff]  }
  0x49   :  { %v2240_v59 = vld [vmem:[#allocation2 + $0x18c] ss:$16 sps:$4 sm:$0xff]   ;;  %v2242_v60 = vld [vmem:[#allocation2 + $0x180] ss:$16 sps:$4 sm:$0xff]   ;;  %v2243_v61 = vld [vmem:[#allocation2 + $0x188] ss:$16 sps:$4 sm:$0xff]  }
  0x4a   :  { %1004 = vmatpush1.bf16.msra.mxu0 %v2194_v21  ;;  %v2244_v62 = vld [vmem:[#allocation2 + $0x1a4] ss:$16 sps:$4 sm:$0xff]   ;;  %v2246_v63 = vld [vmem:[#allocation2 + $0x1ac] ss:$16 sps:$4 sm:$0xff]   ;;  %v2248_v1 = vld [vmem:[#allocation2 + $0x1a0] ss:$16 sps:$4 sm:$0xff]  }
  0x4b   :  { %1086 = vmatpush1.bf16.msra.mxu1 %v2195_v22  ;;  %1005 = vmatprep.subr.bf16.mxu0 %v2196_v23  ;;  %v2249_v2 = vld [vmem:[#allocation2 + $0x1a8] ss:$16 sps:$4 sm:$0xff]   ;;  %v2250_v3 = vld [vmem:[#allocation2 + $0x1c4] ss:$16 sps:$4 sm:$0xff]   ;;  %v2252_v4 = vld [vmem:[#allocation2 + $0x1cc] ss:$16 sps:$4 sm:$0xff]   ;;  %v114_v22 = vrot.slane %v2712_v46, %v2718_v13 }
  0x4c   :  { %1087 = vmatprep.subr.bf16.mxu1 %v2198_v24  ;;  %v2254_v5 = vld [vmem:[#allocation2 + $0x1c0] ss:$16 sps:$4 sm:$0xff]   ;;  %v2255_v6 = vld [vmem:[#allocation2 + $0x1c8] ss:$16 sps:$4 sm:$0xff]   ;;  %v2256_v7 = vld [vmem:[#allocation2 + $0x1e4] ss:$16 sps:$4 sm:$0xff]  }
  0x4d   :  { %v2258_v8 = vld [vmem:[#allocation2 + $0x1ec] ss:$16 sps:$4 sm:$0xff]   ;;  %v2260_v9 = vld [vmem:[#allocation2 + $0x1e0] ss:$16 sps:$4 sm:$0xff]   ;;  %v2261_v10 = vld [vmem:[#allocation2 + $0x1e8] ss:$16 sps:$4 sm:$0xff]  }
  0x4e   :  { %1006 = vmatpush1.bf16.msra.mxu0 %v2200_v25  ;;  %v2264_v11 = vld [vmem:[#allocation2 + $0x204] ss:$16 sps:$4 sm:$0xff]   ;;  %v2267_v12 = vld [vmem:[#allocation2 + $0x20c] ss:$16 sps:$4 sm:$0xff]   ;;  %v2721_v14 = vsub.s32 2, %v2702_v34  ;;  %v97_v15 = vsub.s32 6, %v2702_v34 }
  0x4f   :  { %1088 = vmatpush1.bf16.msra.mxu1 %v2201_v26  ;;  %1007 = vmatprep.subr.bf16.mxu0 %v2202_v27  ;;  %v2725_v16 = vsub.s32 1, %v2702_v34  ;;  %v2728_v17 = vsub.s32 3, %v2702_v34  ;;  %v141_v18 = vsub.s32 7, %v2702_v34  ;;  %v106_v27 = vrot.slane %v86_v19, %v2718_v13  ;;  %v2286_v19 = vld [vmem:[#allocation2 + $0x280] ss:$16 sps:$4 sm:$0xff]   ;;  %s2605_s12 = smov [#allocation8]  }
  0x50   :  { %1089 = vmatprep.subr.bf16.mxu1 %v2204_v28  ;;  %v90_v20 = vrot.slane %v2709_v45, %v2721_v14  ;;  %v98_v21 = vrot.slane %v2709_v45, %v97_v15  ;;  %v2288_v15 = vld [vmem:[#allocation2 + $0x284] ss:$16 sps:$4 sm:$0xff]   ;;  %s1902_s5 = sshll.u32 %s2605_s12, 4  ;;  %s1903_s5 = int_to_ptr.vmem [resolvable:$true] %s1902_s5 }
  0x51   :  { %v130_v23 = vrot.slane %v2709_v45, %v2725_v16  ;;  %v134_v24 = vrot.slane %v2709_v45, %v2728_v17  ;;  %v142_v25 = vrot.slane %v2709_v45, %v141_v18  ;;  %v158_v34 = vrot.slane %v2715_v48, %v2725_v16  ;;  %v2291_v18 = vld [vmem:[#allocation2 + $0x28c] ss:$16 sps:$4 sm:$0xff]   ;;  %s2568_s10 = scalar_lea.vmem %s1903_s5, 256  ;;  %p2573_p11 = scmp.lt.s32.totalorder %s1903_s5, %s1903_s5 }
  0x52   :  { %1008 = vmatpush1.bf16.msra.mxu0 %v2206_v29  ;;  %v110_v28 = vrot.slane %v90_v20, %v2718_v13  ;;  %v118_v29 = vrot.slane %v98_v21, %v2718_v13  ;;  %v2289_v20 = vld [vmem:[#allocation2 + $0x288] ss:$16 sps:$4 sm:$0xff]   ;;  %v2294_v21 = vld [vmem:[#allocation2 + $0x2a4] ss:$16 sps:$4 sm:$0xff]   ;;  %p2569_p10 = scmp.ne.s32.totalorder %s1903_s5, %s2568_s10  ;;  %p2574_p12 = scmp.lt.s32.totalorder %s2568_s10, %s2568_s10 }
  0x53   :  { %1090 = vmatpush1.bf16.msra.mxu1 %v2207_v31  ;;  %1009 = vmatprep.subr.bf16.mxu0 %v2208_v32  ;;  %v171_v31 = vld [vmem:[%s2812_s2] sm:$0xf]  ;;  %v150_v32 = vrot.slane %v130_v23, %v2725_v16 }
  0x54   :  { %1091 = vmatprep.subr.bf16.mxu1 %v2210_v33  ;;  %v154_v33 = vrot.slane %v134_v24, %v2725_v16  ;;  %v2292_v23 = vld [vmem:[#allocation2 + $0x2a0] ss:$16 sps:$4 sm:$0xff]   ;;  %v2295_v24 = vld [vmem:[#allocation2 + $0x2a8] ss:$16 sps:$4 sm:$0xff]   ;;  %p2575_p13 = por %p2574_p12, %p2573_p11 }
  0x56   :  { %1010 = vmatpush1.bf16.msra.mxu0 %v2212_v35  ;;  %v162_v35 = vrot.slane %v142_v25, %v2725_v16  ;;  %v2300_v25 = vld [vmem:[#allocation2 + $0x2c4] ss:$16 sps:$4 sm:$0xff]   ;;  %p2576_p0 = pnand %p2575_p13, %p2569_p10 }
  0x57   :  { %1092 = vmatpush1.bf16.msra.mxu1 %v2213_v36  ;;  %1011 = vmatprep.subr.bf16.mxu0 %v2214_v37  ;;  %v184_v36 = vrot.slane %v171_v31, %v2721_v14  ;;  %v180_v37 = vrot.slane %v171_v31, %v2725_v16 }
  0x58   :  { %1093 = vmatprep.subr.bf16.mxu1 %v2216_v38  ;;  %v176_v38 = vrot.slane %v171_v31, %v2718_v13 }
  0x5a   :  { %1012 = vmatpush1.bf16.msra.mxu0 %v2218_v39 }
  0x5b   :  { %1094 = vmatpush1.bf16.msra.mxu1 %v2219_v41  ;;  %1013 = vmatprep.subr.bf16.mxu0 %v2220_v43  ;;  %v188_v43 = vrot.slane %v171_v31, %v2728_v17  ;;  %v2304_v31 = vld [vmem:[#allocation2 + $0x2e0] ss:$16 sps:$4 sm:$0xff]  }
  0x5c   :  { %1095 = vmatprep.subr.bf16.mxu1 %v2222_v44 }
  0x5e   :  { %1014 = vmatpush1.bf16.msra.mxu0 %v2224_v47 }
  0x5f   :  { %1096 = vmatpush1.bf16.msra.mxu1 %v2225_v49  ;;  %1015 = vmatprep.subr.bf16.mxu0 %v2226_v50 }
  0x60   :  { %1097 = vmatprep.subr.bf16.mxu1 %v2228_v51 }
  0x62   :  { %1016 = vmatpush1.bf16.msra.mxu0 %v2230_v52 }
  0x63   :  { %1098 = vmatpush1.bf16.msra.mxu1 %v2231_v53  ;;  %1017 = vmatprep.subr.bf16.mxu0 %v2232_v54 }
  0x64   :  { %1099 = vmatprep.subr.bf16.mxu1 %v2234_v55 }
  0x66   :  { %1018 = vmatpush1.bf16.msra.mxu0 %v2236_v56 }
  0x67   :  { %1100 = vmatpush1.bf16.msra.mxu1 %v2237_v57  ;;  %1019 = vmatprep.subr.bf16.mxu0 %v2238_v58 }
  0x68   :  { %1101 = vmatprep.subr.bf16.mxu1 %v2240_v59 }
  0x6a   :  { %1020 = vmatpush1.bf16.msra.mxu0 %v2242_v60  ;;  %v2262_v60 = vld [vmem:[#allocation2 + $0x200] ss:$16 sps:$4 sm:$0xff]  }
  0x6b   :  { %1102 = vmatpush1.bf16.msra.mxu1 %v2243_v61  ;;  %1021 = vmatprep.subr.bf16.mxu0 %v2244_v62  ;;  %v2265_v61 = vld [vmem:[#allocation2 + $0x208] ss:$16 sps:$4 sm:$0xff]  }
  0x6c   :  { %1103 = vmatprep.subr.bf16.mxu1 %v2246_v63  ;;  %v2270_v63 = vld [vmem:[#allocation2 + $0x224] ss:$16 sps:$4 sm:$0xff]  }
  0x6e   :  { %1022 = vmatpush1.bf16.msra.mxu0 %v2248_v1  ;;  %v2273_v1 = vld [vmem:[#allocation2 + $0x22c] ss:$16 sps:$4 sm:$0xff]  }
  0x6f   :  { %1104 = vmatpush1.bf16.msra.mxu1 %v2249_v2  ;;  %1023 = vmatprep.subr.bf16.mxu0 %v2250_v3  ;;  %v2268_v3 = vld [vmem:[#allocation2 + $0x220] ss:$16 sps:$4 sm:$0xff]  }
  0x70   :  { %1105 = vmatprep.subr.bf16.mxu1 %v2252_v4  ;;  %v2271_v4 = vld [vmem:[#allocation2 + $0x228] ss:$16 sps:$4 sm:$0xff]  }
  0x72   :  { %1024 = vmatpush1.bf16.msra.mxu0 %v2254_v5  ;;  %v2276_v5 = vld [vmem:[#allocation2 + $0x244] ss:$16 sps:$4 sm:$0xff]  }
  0x73   :  { %1106 = vmatpush1.bf16.msra.mxu1 %v2255_v6  ;;  %1025 = vmatprep.subr.bf16.mxu0 %v2256_v7  ;;  %v2279_v6 = vld [vmem:[#allocation2 + $0x24c] ss:$16 sps:$4 sm:$0xff]   ;;  %v2274_v7 = vld [vmem:[#allocation2 + $0x240] ss:$16 sps:$4 sm:$0xff]  }
  0x74   :  { %1107 = vmatprep.subr.bf16.mxu1 %v2258_v8  ;;  %v2277_v8 = vld [vmem:[#allocation2 + $0x248] ss:$16 sps:$4 sm:$0xff]  }
  0x76   :  { %1026 = vmatpush1.bf16.msra.mxu0 %v2260_v9  ;;  %v2282_v9 = vld [vmem:[#allocation2 + $0x264] ss:$16 sps:$4 sm:$0xff]  }
  0x77   :  { %1108 = vmatpush1.bf16.msra.mxu1 %v2261_v10  ;;  %1036 = vmatprep.subr.bf16.mxu0 %v2264_v11  ;;  %v2285_v10 = vld [vmem:[#allocation2 + $0x26c] ss:$16 sps:$4 sm:$0xff]   ;;  %v2280_v11 = vld [vmem:[#allocation2 + $0x260] ss:$16 sps:$4 sm:$0xff]  }
  0x78   :  { %1118 = vmatprep.subr.bf16.mxu1 %v2267_v12  ;;  %v2283_v12 = vld [vmem:[#allocation2 + $0x268] ss:$16 sps:$4 sm:$0xff]  }
  0xb8   :  { %v80_v26 = vpop.permute.xlu0 %79 }
  0xb9   :  { %v121_v30 = vmul.f32 %v114_v22, %v80_v26  ;;  %v119_v39 = vmul.f32 %v106_v27, %v80_v26  ;;  %v120_v40 = vmul.f32 %v110_v28, %v80_v26  ;;  %v122_v41 = vmul.f32 %v118_v29, %v80_v26  ;;  %v2297_v22 = vld [vmem:[#allocation2 + $0x2ac] ss:$16 sps:$4 sm:$0xff]   ;;  %v2298_v27 = vld [vmem:[#allocation2 + $0x2c0] ss:$16 sps:$4 sm:$0xff]   ;;  %v2301_v28 = vld [vmem:[#allocation2 + $0x2c8] ss:$16 sps:$4 sm:$0xff]  }
  0xba   :  { %v2303_v26 = vld [vmem:[#allocation2 + $0x2cc] ss:$16 sps:$4 sm:$0xff]   ;;  %v2306_v29 = vld [vmem:[#allocation2 + $0x2e4] ss:$16 sps:$4 sm:$0xff]  }
  0xbd   :  { %v125_v42 = vpop.permute.xlu0 %124 }
  0xbe   :  { %v163_v44 = vmul.f32 %v150_v32, %v125_v42  ;;  %v164_v45 = vmul.f32 %v154_v33, %v125_v42  ;;  %v165_v46 = vmul.f32 %v158_v34, %v125_v42  ;;  %v166_v47 = vmul.f32 %v162_v35, %v125_v42  ;;  %v2307_v32 = vld [vmem:[#allocation2 + $0x2e8] ss:$16 sps:$4 sm:$0xff]   ;;  %v2312_v33 = vld [vmem:[#allocation2 + $0x304] ss:$16 sps:$4 sm:$0xff]   ;;  %v2315_v34 = vld [vmem:[#allocation2 + $0x30c] ss:$16 sps:$4 sm:$0xff]  }
  0xbf   :  { %v2310_v35 = vld [vmem:[#allocation2 + $0x300] ss:$16 sps:$4 sm:$0xff]   ;;  %v2327_v42 = vld [vmem:[#allocation2 + $0x34c] ss:$16 sps:$4 sm:$0xff]  }
  0xc0   :  { %v167_v49 = vadd.f32 %v163_v44, %v119_v39  ;;  %v168_v48 = vadd.f32 %v164_v45, %v120_v40  ;;  %v169_v50 = vadd.f32 %v165_v46, %v121_v30  ;;  %v170_v51 = vadd.f32 %v166_v47, %v122_v41  ;;  %v2309_v30 = vld [vmem:[#allocation2 + $0x2ec] ss:$16 sps:$4 sm:$0xff]   ;;  %v2316_v39 = vld [vmem:[#allocation2 + $0x320] ss:$16 sps:$4 sm:$0xff]   ;;  %v2319_v40 = vld [vmem:[#allocation2 + $0x328] ss:$16 sps:$4 sm:$0xff]  }
  0xc1   :  { %v2324_v41 = vld [vmem:[#allocation2 + $0x344] ss:$16 sps:$4 sm:$0xff]   ;;  %v2325_v44 = vld [vmem:[#allocation2 + $0x348] ss:$16 sps:$4 sm:$0xff]   ;;  %v2333_v46 = vld [vmem:[#allocation2 + $0x36c] ss:$16 sps:$4 sm:$0xff]  }
  0xc2   :  { %v2758_v52 = vadd.f32 %v184_v36, %v169_v50  ;;  %v194_v53 = vadd.f32 %v180_v37, %v168_v48  ;;  %v193_v54 = vadd.f32 %v176_v38, %v167_v49  ;;  %v196_v55 = vadd.f32 %v188_v43, %v170_v51  ;;  %v2313_v36 = vld [vmem:[#allocation2 + $0x308] ss:$16 sps:$4 sm:$0xff]   ;;  %v2318_v37 = vld [vmem:[#allocation2 + $0x324] ss:$16 sps:$4 sm:$0xff]   ;;  %v2321_v38 = vld [vmem:[#allocation2 + $0x32c] ss:$16 sps:$4 sm:$0xff]  }
  0xc3   :  { %v2322_v43 = vld [vmem:[#allocation2 + $0x340] ss:$16 sps:$4 sm:$0xff]   ;;  %v2330_v45 = vld [vmem:[#allocation2 + $0x364] ss:$16 sps:$4 sm:$0xff]   ;;  %v2331_v49 = vld [vmem:[#allocation2 + $0x368] ss:$16 sps:$4 sm:$0xff]  }
  0xc4   :  { %v198_v56 = vpack.c.bf16 %v194_v53, %v194_v53  ;;  %v197_v57 = vpack.c.bf16 %v193_v54, %v193_v54  ;;  %v200_v58 = vpack.c.bf16 %v196_v55, %v196_v55  ;;  %v2328_v47 = vld [vmem:[#allocation2 + $0x360] ss:$16 sps:$4 sm:$0xff]   ;;  %v2336_v48 = vld [vmem:[#allocation2 + $0x384] ss:$16 sps:$4 sm:$0xff]   ;;  %v2339_v50 = vld [vmem:[#allocation2 + $0x38c] ss:$16 sps:$4 sm:$0xff]  }
  0xc5   :  { %v2334_v51 = vld [vmem:[#allocation2 + $0x380] ss:$16 sps:$4 sm:$0xff]   ;;  %v2337_v53 = vld [vmem:[#allocation2 + $0x388] ss:$16 sps:$4 sm:$0xff]   ;;  %v2342_v54 = vld [vmem:[#allocation2 + $0x3a4] ss:$16 sps:$4 sm:$0xff]  }
  0xc6   :  { %v202_v59 = vmax.bf16 %v2603_v0, %v198_v56  ;;  %v201_v62 = vmax.bf16 %v2603_v0, %v197_v57  ;;  %v204_v2 = vmax.bf16 %v2603_v0, %v200_v58  ;;  %v2345_v55 = vld [vmem:[#allocation2 + $0x3ac] ss:$16 sps:$4 sm:$0xff]   ;;  %v2340_v56 = vld [vmem:[#allocation2 + $0x3a0] ss:$16 sps:$4 sm:$0xff]   ;;  %v2343_v57 = vld [vmem:[#allocation2 + $0x3a8] ss:$16 sps:$4 sm:$0xff]  }
  0xc7   :  { %v2348_v58 = vld [vmem:[#allocation2 + $0x3c4] ss:$16 sps:$4 sm:$0xff]  }
  0xc8   :  { %1027 = vmatprep.mubr.bf16.mxu0 %v202_v59  ;;  %1109 = vmatprep.mubr.bf16.mxu1 %v202_v59  ;;  %v2351_v59 = vld [vmem:[#allocation2 + $0x3cc] ss:$16 sps:$4 sm:$0xff]  }
  0xc9   :  { %1028 = vmatmul.mubr.bf16.vlgmr.msra.gmra.mrb[0].mxu0 %v201_v62  ;;  %1110 = vmatmul.mubr.bf16.vlgmr.msra.gmra.mrb[0].mxu1 %v201_v62  ;;  %v2354_v62 = vld [vmem:[#allocation2 + $0x3e4] ss:$16 sps:$4 sm:$0xff]  }
  0xca   :  { %1037 = vmatpush1.bf16.msra.mxu0 %v2262_v60  ;;  %1119 = vmatpush1.bf16.msra.mxu1 %v2265_v61  ;;  %v2346_v60 = vld [vmem:[#allocation2 + $0x3c0] ss:$16 sps:$4 sm:$0xff]   ;;  %v2349_v61 = vld [vmem:[#allocation2 + $0x3c8] ss:$16 sps:$4 sm:$0xff]  }
  0xcb   :  { %1068 = vmatprep.mubr.bf16.mxu0 %v204_v2  ;;  %1150 = vmatprep.mubr.bf16.mxu1 %v204_v2  ;;  %v2355_v2 = vld [vmem:[#allocation2 + $0x3e8] ss:$16 sps:$4 sm:$0xff]  }
  0xcc   :  { %1038 = vmatprep.subr.bf16.mxu0 %v2270_v63  ;;  %1120 = vmatprep.subr.bf16.mxu1 %v2273_v1  ;;  %v2357_v63 = vld [vmem:[#allocation2 + $0x3ec] ss:$16 sps:$4 sm:$0xff]   ;;  %v2352_v1 = vld [vmem:[#allocation2 + $0x3e0] ss:$16 sps:$4 sm:$0xff]  }
  0xce   :  { %1039 = vmatpush1.bf16.msra.mxu0 %v2268_v3  ;;  %1121 = vmatpush1.bf16.msra.mxu1 %v2271_v4  ;;  %v199_v3 = vpack.c.bf16 %v2758_v52, %v2758_v52  ;;  %v2360_v4 = vld [vmem:[#allocation5 + $0x4] ss:$8 sps:$4 sm:$0xff]   ;;  %v2369_v52 = vld [vmem:[#allocation5 + $0x34] ss:$8 sps:$4 sm:$0xff]  }
  0xcf   :  { %1040 = vmatprep.subr.bf16.mxu0 %v2276_v5  ;;  %1122 = vmatprep.subr.bf16.mxu1 %v2279_v6  ;;  %v2358_v5 = vld [vmem:[#allocation5] ss:$8 sps:$4 sm:$0xff]  }
  0xd0   :  { %v203_v6 = vmax.bf16 %v2603_v0, %v199_v3  ;;  %v2492_v3 = vld [vmem:[#allocation7 + $0xc4] ss:$8 sps:$4 sm:$0xff]  }
  0xd2   :  { %1041 = vmatpush1.bf16.msra.mxu0 %v2274_v7  ;;  %1123 = vmatpush1.bf16.msra.mxu1 %v2277_v8  ;;  %v2363_v7 = vld [vmem:[#allocation5 + $0x14] ss:$8 sps:$4 sm:$0xff]   ;;  %v2361_v8 = vld [vmem:[#allocation5 + $0x10] ss:$8 sps:$4 sm:$0xff]  }
  0xd3   :  { %1042 = vmatprep.subr.bf16.mxu0 %v2282_v9  ;;  %1124 = vmatprep.subr.bf16.mxu1 %v2285_v10  ;;  %v2366_v9 = vld [vmem:[#allocation5 + $0x24] ss:$8 sps:$4 sm:$0xff]   ;;  %v2364_v10 = vld [vmem:[#allocation5 + $0x20] ss:$8 sps:$4 sm:$0xff]  }
  0xd6   :  { %1043 = vmatpush1.bf16.msra.mxu0 %v2280_v11  ;;  %1125 = vmatpush1.bf16.msra.mxu1 %v2283_v12  ;;  %v2367_v11 = vld [vmem:[#allocation5 + $0x30] ss:$8 sps:$4 sm:$0xff]   ;;  %v2372_v12 = vld [vmem:[#allocation5 + $0x44] ss:$8 sps:$4 sm:$0xff]  }
  0xd7   :  { %1044 = vmatprep.subr.bf16.mxu0 %v2288_v15  ;;  %1126 = vmatprep.subr.bf16.mxu1 %v2291_v18  ;;  %v2370_v15 = vld [vmem:[#allocation5 + $0x40] ss:$8 sps:$4 sm:$0xff]   ;;  %v2375_v18 = vld [vmem:[#allocation5 + $0x54] ss:$8 sps:$4 sm:$0xff]  }
  0xda   :  { %1045 = vmatpush1.bf16.msra.mxu0 %v2286_v19  ;;  %1127 = vmatpush1.bf16.msra.mxu1 %v2289_v20  ;;  %v2373_v19 = vld [vmem:[#allocation5 + $0x50] ss:$8 sps:$4 sm:$0xff]   ;;  %v2378_v20 = vld [vmem:[#allocation5 + $0x64] ss:$8 sps:$4 sm:$0xff]  }
  0xdb   :  { %1046 = vmatprep.subr.bf16.mxu0 %v2294_v21  ;;  %1128 = vmatprep.subr.bf16.mxu1 %v2297_v22  ;;  %v2376_v21 = vld [vmem:[#allocation5 + $0x60] ss:$8 sps:$4 sm:$0xff]   ;;  %v2381_v22 = vld [vmem:[#allocation5 + $0x74] ss:$8 sps:$4 sm:$0xff]  }
  0xde   :  { %1047 = vmatpush1.bf16.msra.mxu0 %v2292_v23  ;;  %1129 = vmatpush1.bf16.msra.mxu1 %v2295_v24  ;;  %v2379_v23 = vld [vmem:[#allocation5 + $0x70] ss:$8 sps:$4 sm:$0xff]   ;;  %v2384_v24 = vld [vmem:[#allocation5 + $0x84] ss:$8 sps:$4 sm:$0xff]  }
  0xdf   :  { %1048 = vmatprep.subr.bf16.mxu0 %v2300_v25  ;;  %1130 = vmatprep.subr.bf16.mxu1 %v2303_v26  ;;  %v2382_v25 = vld [vmem:[#allocation5 + $0x80] ss:$8 sps:$4 sm:$0xff]   ;;  %v2387_v26 = vld [vmem:[#allocation5 + $0x94] ss:$8 sps:$4 sm:$0xff]  }
  0xe2   :  { %1049 = vmatpush1.bf16.msra.mxu0 %v2298_v27  ;;  %1131 = vmatpush1.bf16.msra.mxu1 %v2301_v28  ;;  %v2385_v27 = vld [vmem:[#allocation5 + $0x90] ss:$8 sps:$4 sm:$0xff]   ;;  %v2390_v28 = vld [vmem:[#allocation5 + $0xa4] ss:$8 sps:$4 sm:$0xff]  }
  0xe3   :  { %1050 = vmatprep.subr.bf16.mxu0 %v2306_v29  ;;  %1132 = vmatprep.subr.bf16.mxu1 %v2309_v30  ;;  %v2388_v29 = vld [vmem:[#allocation5 + $0xa0] ss:$8 sps:$4 sm:$0xff]   ;;  %v2393_v30 = vld [vmem:[#allocation5 + $0xb4] ss:$8 sps:$4 sm:$0xff]  }
  0xe6   :  { %1051 = vmatpush1.bf16.msra.mxu0 %v2304_v31  ;;  %1133 = vmatpush1.bf16.msra.mxu1 %v2307_v32  ;;  %v2391_v31 = vld [vmem:[#allocation5 + $0xb0] ss:$8 sps:$4 sm:$0xff]   ;;  %v2396_v32 = vld [vmem:[#allocation5 + $0xc4] ss:$8 sps:$4 sm:$0xff]  }
  0xe7   :  { %1052 = vmatprep.subr.bf16.mxu0 %v2312_v33  ;;  %1134 = vmatprep.subr.bf16.mxu1 %v2315_v34  ;;  %v2394_v33 = vld [vmem:[#allocation5 + $0xc0] ss:$8 sps:$4 sm:$0xff]   ;;  %v2399_v34 = vld [vmem:[#allocation5 + $0xd4] ss:$8 sps:$4 sm:$0xff]  }
  0xea   :  { %1053 = vmatpush1.bf16.msra.mxu0 %v2310_v35  ;;  %1135 = vmatpush1.bf16.msra.mxu1 %v2313_v36  ;;  %v2397_v35 = vld [vmem:[#allocation5 + $0xd0] ss:$8 sps:$4 sm:$0xff]   ;;  %v2402_v36 = vld [vmem:[#allocation5 + $0xe4] ss:$8 sps:$4 sm:$0xff]  }
  0xeb   :  { %1054 = vmatprep.subr.bf16.mxu0 %v2318_v37  ;;  %1136 = vmatprep.subr.bf16.mxu1 %v2321_v38  ;;  %v2400_v37 = vld [vmem:[#allocation5 + $0xe0] ss:$8 sps:$4 sm:$0xff]   ;;  %v2405_v38 = vld [vmem:[#allocation5 + $0xf4] ss:$8 sps:$4 sm:$0xff]  }
  0xee   :  { %1055 = vmatpush1.bf16.msra.mxu0 %v2316_v39  ;;  %1137 = vmatpush1.bf16.msra.mxu1 %v2319_v40  ;;  %v2403_v39 = vld [vmem:[#allocation5 + $0xf0] ss:$8 sps:$4 sm:$0xff]   ;;  %v2408_v40 = vld [vmem:[#allocation5 + $0x104] ss:$8 sps:$4 sm:$0xff]  }
  0xef   :  { %1056 = vmatprep.subr.bf16.mxu0 %v2324_v41  ;;  %1138 = vmatprep.subr.bf16.mxu1 %v2327_v42  ;;  %v2454_v41 = vld [vmem:[#allocation7] ss:$8 sps:$4 sm:$0xff]   ;;  %v2456_v42 = vld [vmem:[#allocation7 + $0x4] ss:$8 sps:$4 sm:$0xff]  }
  0xf2   :  { %1057 = vmatpush1.bf16.msra.mxu0 %v2322_v43  ;;  %1139 = vmatpush1.bf16.msra.mxu1 %v2325_v44  ;;  %v2459_v43 = vld [vmem:[#allocation7 + $0x14] ss:$8 sps:$4 sm:$0xff]   ;;  %v2457_v44 = vld [vmem:[#allocation7 + $0x10] ss:$8 sps:$4 sm:$0xff]  }
  0xf3   :  { %1058 = vmatprep.subr.bf16.mxu0 %v2330_v45  ;;  %1140 = vmatprep.subr.bf16.mxu1 %v2333_v46  ;;  %v2462_v45 = vld [vmem:[#allocation7 + $0x24] ss:$8 sps:$4 sm:$0xff]   ;;  %v2460_v46 = vld [vmem:[#allocation7 + $0x20] ss:$8 sps:$4 sm:$0xff]  }
  0xf6   :  { %1059 = vmatpush1.bf16.msra.mxu0 %v2328_v47  ;;  %1141 = vmatpush1.bf16.msra.mxu1 %v2331_v49  ;;  %v2465_v47 = vld [vmem:[#allocation7 + $0x34] ss:$8 sps:$4 sm:$0xff]   ;;  %v2463_v49 = vld [vmem:[#allocation7 + $0x30] ss:$8 sps:$4 sm:$0xff]  }
  0xf7   :  { %1060 = vmatprep.subr.bf16.mxu0 %v2336_v48  ;;  %1142 = vmatprep.subr.bf16.mxu1 %v2339_v50  ;;  %v2468_v48 = vld [vmem:[#allocation7 + $0x44] ss:$8 sps:$4 sm:$0xff]   ;;  %v2466_v50 = vld [vmem:[#allocation7 + $0x40] ss:$8 sps:$4 sm:$0xff]  }
  0xfa   :  { %1061 = vmatpush1.bf16.msra.mxu0 %v2334_v51  ;;  %1143 = vmatpush1.bf16.msra.mxu1 %v2337_v53  ;;  %v2471_v51 = vld [vmem:[#allocation7 + $0x54] ss:$8 sps:$4 sm:$0xff]   ;;  %v2469_v53 = vld [vmem:[#allocation7 + $0x50] ss:$8 sps:$4 sm:$0xff]  }
  0xfb   :  { %1062 = vmatprep.subr.bf16.mxu0 %v2342_v54  ;;  %1144 = vmatprep.subr.bf16.mxu1 %v2345_v55  ;;  %v2474_v54 = vld [vmem:[#allocation7 + $0x64] ss:$8 sps:$4 sm:$0xff]   ;;  %v2472_v55 = vld [vmem:[#allocation7 + $0x60] ss:$8 sps:$4 sm:$0xff]  }
  0xfe   :  { %1063 = vmatpush1.bf16.msra.mxu0 %v2340_v56  ;;  %1145 = vmatpush1.bf16.msra.mxu1 %v2343_v57  ;;  %v2477_v56 = vld [vmem:[#allocation7 + $0x74] ss:$8 sps:$4 sm:$0xff]   ;;  %v2475_v57 = vld [vmem:[#allocation7 + $0x70] ss:$8 sps:$4 sm:$0xff]  }
  0xff   :  { %1064 = vmatprep.subr.bf16.mxu0 %v2348_v58  ;;  %1146 = vmatprep.subr.bf16.mxu1 %v2351_v59  ;;  %v2480_v58 = vld [vmem:[#allocation7 + $0x84] ss:$8 sps:$4 sm:$0xff]   ;;  %v2478_v59 = vld [vmem:[#allocation7 + $0x80] ss:$8 sps:$4 sm:$0xff]  }
 0x102   :  { %1065 = vmatpush1.bf16.msra.mxu0 %v2346_v60  ;;  %1147 = vmatpush1.bf16.msra.mxu1 %v2349_v61  ;;  %v2483_v60 = vld [vmem:[#allocation7 + $0x94] ss:$8 sps:$4 sm:$0xff]   ;;  %v2481_v61 = vld [vmem:[#allocation7 + $0x90] ss:$8 sps:$4 sm:$0xff]  }
 0x103   :  { %1066 = vmatprep.subr.bf16.mxu0 %v2354_v62  ;;  %1148 = vmatprep.subr.bf16.mxu1 %v2357_v63  ;;  %v2486_v62 = vld [vmem:[#allocation7 + $0xa4] ss:$8 sps:$4 sm:$0xff]   ;;  %v2484_v63 = vld [vmem:[#allocation7 + $0xa0] ss:$8 sps:$4 sm:$0xff]  }
 0x106   :  { %1067 = vmatpush1.bf16.msra.mxu0 %v2352_v1  ;;  %1149 = vmatpush1.bf16.msra.mxu1 %v2355_v2  ;;  %v2489_v1 = vld [vmem:[#allocation7 + $0xb4] ss:$8 sps:$4 sm:$0xff]   ;;  %v2487_v2 = vld [vmem:[#allocation7 + $0xb0] ss:$8 sps:$4 sm:$0xff]  }
 0x107   :  { %1563 = vmatprep.subr.bf16.mxu0 %v2360_v4  ;;  %1853 = vmatprep.subr.bf16.mxu1 %v2456_v42  ;;  %v2490_v4 = vld [vmem:[#allocation7 + $0xc0] ss:$8 sps:$4 sm:$0xff]  }
 0x108   :  { %v2424_v42 = vld [vmem:[#allocation5 + $0x160] ss:$8 sps:$4 sm:$0xff]  }
 0x109   :  { %1069 = vmatmul.mubr.bf16.vlgmr.msra.gmra.mrb[0].mxu0 %v203_v6  ;;  %1151 = vmatmul.mubr.bf16.vlgmr.msra.gmra.mrb[0].mxu1 %v203_v6  ;;  %v2769_v6 = vld [vmem:[%s2814_s4] sm:$0xf] }
 0x10a   :  { %1564 = vmatpush1.bf16.msra.mxu0 %v2358_v5  ;;  %1854 = vmatpush1.bf16.msra.mxu1 %v2454_v41  ;;  %v2495_v5 = vld [vmem:[#allocation7 + $0xd4] ss:$8 sps:$4 sm:$0xff]   ;;  %v2426_v41 = vld [vmem:[#allocation5 + $0x164] ss:$8 sps:$4 sm:$0xff]  }
 0x10b   :  { %1565 = vmatprep.subr.bf16.mxu0 %v2363_v7  ;;  %1855 = vmatprep.subr.bf16.mxu1 %v2459_v43  ;;  %v2493_v7 = vld [vmem:[#allocation7 + $0xd0] ss:$8 sps:$4 sm:$0xff]   ;;  %v2429_v43 = vld [vmem:[#allocation5 + $0x174] ss:$8 sps:$4 sm:$0xff]  }
 0x10e   :  { %1566 = vmatpush1.bf16.msra.mxu0 %v2361_v8  ;;  %1856 = vmatpush1.bf16.msra.mxu1 %v2457_v44  ;;  %v338_v8 = vrot.slane %v2769_v6, %v2718_v13  ;;  %v2427_v44 = vld [vmem:[#allocation5 + $0x170] ss:$8 sps:$4 sm:$0xff]  }
 0x10f   :  { %1567 = vmatprep.subr.bf16.mxu0 %v2366_v9  ;;  %1857 = vmatprep.subr.bf16.mxu1 %v2462_v45  ;;  %v342_v9 = vrot.slane %v2769_v6, %v2725_v16  ;;  %v2432_v45 = vld [vmem:[#allocation5 + $0x184] ss:$8 sps:$4 sm:$0xff]  }
 0x112   :  { %1568 = vmatpush1.bf16.msra.mxu0 %v2364_v10  ;;  %1858 = vmatpush1.bf16.msra.mxu1 %v2460_v46  ;;  %v350_v10 = vrot.slane %v2769_v6, %v2728_v17  ;;  %v2430_v46 = vld [vmem:[#allocation5 + $0x180] ss:$8 sps:$4 sm:$0xff]  }
 0x113   :  { %1569 = vmatprep.subr.bf16.mxu0 %v2369_v52  ;;  %1859 = vmatprep.subr.bf16.mxu1 %v2465_v47  ;;  %v2435_v47 = vld [vmem:[#allocation5 + $0x194] ss:$8 sps:$4 sm:$0xff]  }
 0x116   :  { %1570 = vmatpush1.bf16.msra.mxu0 %v2367_v11  ;;  %1860 = vmatpush1.bf16.msra.mxu1 %v2463_v49  ;;  %v2433_v49 = vld [vmem:[#allocation5 + $0x190] ss:$8 sps:$4 sm:$0xff]  }
 0x117   :  { %1571 = vmatprep.subr.bf16.mxu0 %v2372_v12  ;;  %1861 = vmatprep.subr.bf16.mxu1 %v2468_v48  ;;  %v2438_v48 = vld [vmem:[#allocation5 + $0x1a4] ss:$8 sps:$4 sm:$0xff]  }
 0x11a   :  { %1572 = vmatpush1.bf16.msra.mxu0 %v2370_v15  ;;  %1862 = vmatpush1.bf16.msra.mxu1 %v2466_v50  ;;  %v2436_v50 = vld [vmem:[#allocation5 + $0x1a0] ss:$8 sps:$4 sm:$0xff]  }
 0x11b   :  { %1573 = vmatprep.subr.bf16.mxu0 %v2375_v18  ;;  %1863 = vmatprep.subr.bf16.mxu1 %v2471_v51  ;;  %v2441_v51 = vld [vmem:[#allocation5 + $0x1b4] ss:$8 sps:$4 sm:$0xff]  }
 0x11e   :  { %1574 = vmatpush1.bf16.msra.mxu0 %v2373_v19  ;;  %1864 = vmatpush1.bf16.msra.mxu1 %v2469_v53  ;;  %v2439_v53 = vld [vmem:[#allocation5 + $0x1b0] ss:$8 sps:$4 sm:$0xff]  }
 0x11f   :  { %1575 = vmatprep.subr.bf16.mxu0 %v2378_v20  ;;  %1865 = vmatprep.subr.bf16.mxu1 %v2474_v54  ;;  %v2444_v54 = vld [vmem:[#allocation5 + $0x1c4] ss:$8 sps:$4 sm:$0xff]  }
 0x122   :  { %1576 = vmatpush1.bf16.msra.mxu0 %v2376_v21  ;;  %1866 = vmatpush1.bf16.msra.mxu1 %v2472_v55  ;;  %v2442_v55 = vld [vmem:[#allocation5 + $0x1c0] ss:$8 sps:$4 sm:$0xff]  }
 0x123   :  { %1577 = vmatprep.subr.bf16.mxu0 %v2381_v22  ;;  %1867 = vmatprep.subr.bf16.mxu1 %v2477_v56  ;;  %v2447_v56 = vld [vmem:[#allocation5 + $0x1d4] ss:$8 sps:$4 sm:$0xff]  }
 0x126   :  { %1578 = vmatpush1.bf16.msra.mxu0 %v2379_v23  ;;  %1868 = vmatpush1.bf16.msra.mxu1 %v2475_v57  ;;  %v2445_v57 = vld [vmem:[#allocation5 + $0x1d0] ss:$8 sps:$4 sm:$0xff]  }
 0x127   :  { %1579 = vmatprep.subr.bf16.mxu0 %v2384_v24  ;;  %1869 = vmatprep.subr.bf16.mxu1 %v2480_v58  ;;  %v346_v58 = vrot.slane %v2769_v6, %v2721_v14  ;;  %v2501_v14 = vld [vmem:[#allocation7 + $0xf4] ss:$8 sps:$4 sm:$0xff]   ;;  %v1231_v6 = vld [vmem:[%s2816_s6] sm:$0x3] }
 0x12a   :  { %1580 = vmatpush1.bf16.msra.mxu0 %v2382_v25  ;;  %1870 = vmatpush1.bf16.msra.mxu1 %v2478_v59  ;;  %v2450_v59 = vld [vmem:[#allocation5 + $0x1e4] ss:$8 sps:$4 sm:$0xff]  }
 0x12b   :  { %1581 = vmatprep.subr.bf16.mxu0 %v2387_v26  ;;  %1871 = vmatprep.subr.bf16.mxu1 %v2483_v60  ;;  %v2448_v60 = vld [vmem:[#allocation5 + $0x1e0] ss:$8 sps:$4 sm:$0xff]  }
 0x12e   :  { %1582 = vmatpush1.bf16.msra.mxu0 %v2385_v27  ;;  %1872 = vmatpush1.bf16.msra.mxu1 %v2481_v61 }
 0x12f   :  { %1583 = vmatprep.subr.bf16.mxu0 %v2390_v28  ;;  %1873 = vmatprep.subr.bf16.mxu1 %v2486_v62  ;;  %v2453_v62 = vld [vmem:[#allocation5 + $0x1f4] ss:$8 sps:$4 sm:$0xff]  }
 0x132   :  { %1584 = vmatpush1.bf16.msra.mxu0 %v2388_v29  ;;  %1874 = vmatpush1.bf16.msra.mxu1 %v2484_v63  ;;  %v2406_v29 = vld [vmem:[#allocation5 + $0x100] ss:$8 sps:$4 sm:$0xff]   ;;  %v2451_v63 = vld [vmem:[#allocation5 + $0x1f0] ss:$8 sps:$4 sm:$0xff]  }
 0x133   :  { %1585 = vmatprep.subr.bf16.mxu0 %v2393_v30  ;;  %1875 = vmatprep.subr.bf16.mxu1 %v2489_v1  ;;  %v2411_v30 = vld [vmem:[#allocation5 + $0x114] ss:$8 sps:$4 sm:$0xff]  }
 0x136   :  { %1586 = vmatpush1.bf16.msra.mxu0 %v2391_v31  ;;  %1876 = vmatpush1.bf16.msra.mxu1 %v2487_v2 }
 0x137   :  { %1587 = vmatprep.subr.bf16.mxu0 %v2396_v32  ;;  %1877 = vmatprep.subr.bf16.mxu1 %v2492_v3  ;;  %v2409_v32 = vld [vmem:[#allocation5 + $0x110] ss:$8 sps:$4 sm:$0xff]   ;;  %v2498_v3 = vld [vmem:[#allocation7 + $0xe4] ss:$8 sps:$4 sm:$0xff]  }
 0x13a   :  { %1588 = vmatpush1.bf16.msra.mxu0 %v2394_v33  ;;  %1878 = vmatpush1.bf16.msra.mxu1 %v2490_v4  ;;  %v2414_v33 = vld [vmem:[#allocation5 + $0x124] ss:$8 sps:$4 sm:$0xff]   ;;  %v2496_v4 = vld [vmem:[#allocation7 + $0xe0] ss:$8 sps:$4 sm:$0xff]  }
 0x13b   :  { %1589 = vmatprep.subr.bf16.mxu0 %v2399_v34  ;;  %1879 = vmatprep.subr.bf16.mxu1 %v2495_v5  ;;  %v2412_v34 = vld [vmem:[#allocation5 + $0x120] ss:$8 sps:$4 sm:$0xff]   ;;  %v2499_v5 = vld [vmem:[#allocation7 + $0xf0] ss:$8 sps:$4 sm:$0xff]  }
 0x13e   :  { %1590 = vmatpush1.bf16.msra.mxu0 %v2397_v35  ;;  %1880 = vmatpush1.bf16.msra.mxu1 %v2493_v7  ;;  %v2417_v35 = vld [vmem:[#allocation5 + $0x134] ss:$8 sps:$4 sm:$0xff]   ;;  %v1236_v7 = vrot.slane %v1231_v6, %v2718_v13 }
 0x13f   :  { %1591 = vmatprep.subr.bf16.mxu0 %v2402_v36  ;;  %v2415_v36 = vld [vmem:[#allocation5 + $0x130] ss:$8 sps:$4 sm:$0xff]   ;;  %1881 = vmatprep.subr.bf16.mxu1 %v2498_v3 }
 0x142   :  { %1592 = vmatpush1.bf16.msra.mxu0 %v2400_v37  ;;  %v2420_v37 = vld [vmem:[#allocation5 + $0x144] ss:$8 sps:$4 sm:$0xff]   ;;  %1882 = vmatpush1.bf16.msra.mxu1 %v2496_v4 }
 0x143   :  { %1593 = vmatprep.subr.bf16.mxu0 %v2405_v38  ;;  %v2418_v38 = vld [vmem:[#allocation5 + $0x140] ss:$8 sps:$4 sm:$0xff]   ;;  %1883 = vmatprep.subr.bf16.mxu1 %v2501_v14 }
 0x146   :  { %1594 = vmatpush1.bf16.msra.mxu0 %v2403_v39  ;;  %v2423_v39 = vld [vmem:[#allocation5 + $0x154] ss:$8 sps:$4 sm:$0xff]   ;;  %1884 = vmatpush1.bf16.msra.mxu1 %v2499_v5 }
 0x147   :  { %1604 = vmatprep.subr.bf16.mxu0 %v2408_v40  ;;  %v2421_v40 = vld [vmem:[#allocation5 + $0x150] ss:$8 sps:$4 sm:$0xff]  }
 0x1dc   :  { %v1070_v52 = vpop.f32.mrb[0].mxu0  ;;  %v2777_v11 = vpop.f32.mrb[0].mxu1 }
 0x1dd   :  { %v2136_v12 = vadd.f32 %v1070_v52, %v338_v8  ;;  %v1072_v15 = vpop.f32.mrb[1].mxu0  ;;  %v1154_v18 = vpop.f32.mrb[1].mxu1  ;;  %v2138_v61 = vadd.f32 %v2777_v11, %v346_v58  ;;  %v1240_v8 = vrot.slane %v1231_v6, %v2725_v16 }
 0x1de   :  { %v2137_v19 = vadd.f32 %v1072_v15, %v342_v9  ;;  %v2139_v20 = vadd.f32 %v1154_v18, %v350_v10  ;;  %v1074_v21 = vpop.f32.mrb[2].mxu0  ;;  %v1156_v22 = vpop.f32.mrb[2].mxu1 }
 0x1df   :  { %v1159_v23 = vpack.c.bf16 %v2136_v12, %v2136_v12  ;;  %v1075_v24 = vpop.f32.mrb[3].mxu0  ;;  %v1157_v25 = vpop.f32.mrb[3].mxu1  ;;  %v1161_v1 = vpack.c.bf16 %v2138_v61, %v2138_v61  ;;  %v1681_v22 = vld [vmem:[%s2818_s8] sm:$0x3] }
 0x1e0   :  { %v1160_v26 = vpack.c.bf16 %v2137_v19, %v2137_v19  ;;  %v1162_v27 = vpack.c.bf16 %v2139_v20, %v2139_v20  ;;  %v1690_v24 = vrot.slane %v1681_v22, %v2725_v16 }
 0x1e1   :  { %v1163_v17 = vmax.bf16 %v2603_v0, %v1159_v23  ;;  %v1165_v2 = vmax.bf16 %v2603_v0, %v1161_v1  ;;  %v1686_v23 = vrot.slane %v1681_v22, %v2718_v13 }
 0x1e2   :  { %v1164_v28 = vmax.bf16 %v2603_v0, %v1160_v26  ;;  %v1166_v31 = vmax.bf16 %v2603_v0, %v1162_v27 }
 0x1e4   :  { %1595 = vmatprep.mubr.bf16.mxu0 %v1164_v28 }
 0x1e5   :  { %1596 = vmatmul.mubr.bf16.vlgmr.msra.gmra.mrb[4].mxu0 %v1163_v17 }
 0x1e6   :  { %1605 = vmatpush1.bf16.msra.mxu0 %v2406_v29  ;;  %1636 = vmatprep.mubr.bf16.mxu0 %v1166_v31 }
 0x1e7   :  { %1606 = vmatprep.subr.bf16.mxu0 %v2411_v30 }
 0x1ea   :  { %1607 = vmatpush1.bf16.msra.mxu0 %v2409_v32 }
 0x1eb   :  { %1608 = vmatprep.subr.bf16.mxu0 %v2414_v33 }
 0x1ee   :  { %1609 = vmatpush1.bf16.msra.mxu0 %v2412_v34 }
 0x1ef   :  { %1610 = vmatprep.subr.bf16.mxu0 %v2417_v35 }
 0x1f2   :  { %1611 = vmatpush1.bf16.msra.mxu0 %v2415_v36 }
 0x1f3   :  { %1612 = vmatprep.subr.bf16.mxu0 %v2420_v37 }
 0x1f6   :  { %1613 = vmatpush1.bf16.msra.mxu0 %v2418_v38 }
 0x1f7   :  { %1614 = vmatprep.subr.bf16.mxu0 %v2423_v39 }
 0x1fa   :  { %1615 = vmatpush1.bf16.msra.mxu0 %v2421_v40 }
 0x1fb   :  { %1616 = vmatprep.subr.bf16.mxu0 %v2426_v41 }
 0x1fe   :  { %1617 = vmatpush1.bf16.msra.mxu0 %v2424_v42 }
 0x1ff   :  { %1618 = vmatprep.subr.bf16.mxu0 %v2429_v43 }
 0x202   :  { %1619 = vmatpush1.bf16.msra.mxu0 %v2427_v44 }
 0x203   :  { %1620 = vmatprep.subr.bf16.mxu0 %v2432_v45 }
 0x206   :  { %1621 = vmatpush1.bf16.msra.mxu0 %v2430_v46 }
 0x207   :  { %1622 = vmatprep.subr.bf16.mxu0 %v2435_v47 }
 0x20a   :  { %1623 = vmatpush1.bf16.msra.mxu0 %v2433_v49 }
 0x20b   :  { %1624 = vmatprep.subr.bf16.mxu0 %v2438_v48 }
 0x20e   :  { %1625 = vmatpush1.bf16.msra.mxu0 %v2436_v50 }
 0x20f   :  { %1626 = vmatprep.subr.bf16.mxu0 %v2441_v51 }
 0x212   :  { %1627 = vmatpush1.bf16.msra.mxu0 %v2439_v53 }
 0x213   :  { %1628 = vmatprep.subr.bf16.mxu0 %v2444_v54 }
 0x216   :  { %1629 = vmatpush1.bf16.msra.mxu0 %v2442_v55 }
 0x217   :  { %1630 = vmatprep.subr.bf16.mxu0 %v2447_v56 }
 0x21a   :  { %1631 = vmatpush1.bf16.msra.mxu0 %v2445_v57 }
 0x21b   :  { %1632 = vmatprep.subr.bf16.mxu0 %v2450_v59 }
 0x21e   :  { %1633 = vmatpush1.bf16.msra.mxu0 %v2448_v60 }
 0x21f   :  { %1634 = vmatprep.subr.bf16.mxu0 %v2453_v62 }
 0x222   :  { %1635 = vmatpush1.bf16.msra.mxu0 %v2451_v63 }
 0x225   :  { %1637 = vmatmul.mubr.bf16.vlgmr.msra.gmra.mrb[4].mxu0 %v1165_v2 }
 0x2f8   :  { %v1638_v9 = vpop.f32.mrb[4].mxu0 }
 0x2f9   :  { %v2140_v10 = vadd.f32 %v1638_v9, %v1236_v7  ;;  %v1640_v52 = vpop.f32.mrb[5].mxu0 }
 0x2fa   :  { %v2141_v11 = vadd.f32 %v1640_v52, %v1240_v8  ;;  %v1642_v12 = vpop.f32.mrb[6].mxu0 }
 0x2fb   :  { %v1645_v15 = vpack.c.bf16 %v2140_v10, %v2140_v10  ;;  %v1643_v18 = vpop.f32.mrb[7].mxu0 }
 0x2fc   :  { %v1646_v19 = vpack.c.bf16 %v2141_v11, %v2141_v11 }
 0x2fd   :  { %v1647_v21 = vmax.bf16 %v2603_v0, %v1645_v15 }
 0x2fe   :  { %v1648_v20 = vmax.bf16 %v2603_v0, %v1646_v19 }
 0x300   :  { %1885 = vmatprep.mubr.bf16.mxu1 %v1648_v20 }
 0x301   :  { %1886 = vmatmul.mubr.bf16.vlgmr.msra.gmra.mrb[4].mxu1 %v1647_v21 }
 0x3d4   :  { %v1887_v25 = vpop.f32.mrb[4].mxu1 }
 0x3d5   :  { %v1888_v26 = vadd.f32 %v1887_v25, %v1686_v23  ;;  %v1889_v27 = vpop.f32.mrb[5].mxu1 }
 0x3d6   :  { %v1890_v28 = vadd.f32 %v1889_v27, %v1690_v24  ;;  %v1891_v29 = vpop.f32.mrb[6].mxu1 }
 0x3d7   :  { %1894 = vst [vmem:[#allocation8] sm:$0xff] %v1888_v26  ;;  %v1892_v0 = vpop.f32.mrb[7].mxu1 }
 0x3d8   :  { %1895 = vst [vmem:[#allocation8 + $0x8] sm:$0xff] %v1890_v28 }
 0x3d9   :  { %2579 = shalt.err (!%p2576_p0)
}
 0x3da   :  { %s2580_s14 = scalar_lea.hbm %s2819_s9, 256 }
 0x3db   :  { %p2581_p1 = scmp.ne.s32.totalorder %s2819_s9, %s2580_s14  ;;  %p2584_p2 = scmp.lt.u32.totalorder %s2580_s14, %s2819_s9 }
 0x3dd   :  { %p2586_p3 = pnand %p2584_p2, %p2581_p1 }
 0x3df   :  { %2589 = shalt.err (!%p2586_p3)
}
 0x3e0   :  { %1905 = dma.vmem_to_hbm [thread:$0]  %s1903_s5, 256, %s2819_s9, [#allocation4]  }
 0x3e1   :  { %2594 = dma.done.wait [#allocation4], 256  }
 0x3e2   :  { %2595 = vsyncadd [#allocation4], 4294967040 }
 0x3e3   :  { %1909 = vsyncpa [#allocation3], 1 }
 0x3e4   :  { %1910 = vsyncpa [#allocation6], 1 }
 0x3e5   :  { %1911 = vsyncpa [#allocation4], 1 }

</bundles_post_ra>
